<compile_context>
chip_gen: v7x
topology: tpu7x:2x2x1
jax: 0.10.0
libtpu: 0.0.40
codegen_flags: <defaults>
</compile_context>

<pallas_src>
import itertools
import math

import numpy as np
import jax
import jax.numpy as jnp
from jax.experimental import pallas as pl
from jax.experimental.pallas import tpu as pltpu


def _pbcombi_hidden_kernel(x_ref, st_ref, erf_ref, o_ref):
    xh = x_ref[...]          # (TB, d)   x pre-scaled by 0.5 in the wrapper
    st = st_ref[...]         # (d, S)    sign patterns, lane axis = S (f32)
    erf_val = erf_ref[...]   # (S, Npad) precomputed erf table (bf16 / f32)

    d = xh.shape[1]

    # p_s_m[b, j] = prod_k (0.5 + (0.5*x[b,k]) * st[k, j])   -> (TB, S)
    # Static unroll over the small in_features dim; seed acc with k = 0.
    acc = 0.5 + xh[:, 0:1] * st[0:1, :]
    for k in range(1, d):
        acc = acc * (0.5 + xh[:, k:k + 1] * st[k:k + 1, :])

    # (TB, S) @ (S, Npad) on the MXU (bf16 operands, f32 accumulation),
    # lane-dense unmasked output store.
    o_ref[...] = jnp.dot(acc.astype(erf_val.dtype), erf_val,
                         preferred_element_type=jnp.float32).astype(o_ref.dtype)


def make_erf_table(weight, bias, s, *, matmul_dtype=jnp.bfloat16):
    """Batch-invariant (S, Npad) erf table, zero-padded to a multiple of 128
    lanes.  If weight/bias/s are static across calls, compute this once and
    pass it via pbcombi_hidden_forward(..., erf_table=...)."""
    out_features, d = weight.shape
    weight = weight.astype(jnp.float32)
    bias = bias.astype(jnp.float32)
    s = s.astype(jnp.float32)

    erf_val = jax.lax.erf((s @ weight.T + bias[None, :])
                          * (1.0 / math.sqrt(2.0 * d)))          # (S, out)

    n_pad = max(128, ((out_features + 127) // 128) * 128)
    if n_pad != out_features:
        erf_val = jnp.pad(erf_val, ((0, 0), (0, n_pad - out_features)))
    return erf_val.astype(matmul_dtype)


def pbcombi_hidden_forward(x, weight, bias, s, *, block_b=2048,
                           erf_table=None, matmul_dtype=jnp.bfloat16):
    """x: (B, d), weight: (out, d), bias: (out,), s: (2**d, d) sign patterns."""
    B, d = x.shape
    out_features = weight.shape[0]
    S = s.shape[0]

    x = x.astype(jnp.float32)
    st = s.astype(jnp.float32).T                                  # (d, S)

    if erf_table is None:
        erf_table = make_erf_table(weight, bias, s, matmul_dtype=matmul_dtype)
    n_pad = erf_table.shape[1]

    # Fold the 0.5 factor into x once (tiny (B, d) op in XLA); the kernel then
    # computes 0.5 + x_half*s, saving one VPU mul per factor per element.
    x_half = 0.5 * x

    # Batch tiling: tile multiple of 8, large enough to amortize per-step
    # overhead, but with >= 2 grid steps when possible so the "parallel"
    # axis shards across both v7x TensorCores.
    b_pad8 = ((B + 7) // 8) * 8
    tb = min(block_b, b_pad8)
    if b_pad8 >= 16:
        tb = min(tb, ((b_pad8 // 2 + 7) // 8) * 8)
    tb = max(tb, 8)
    b_pad = ((B + tb - 1) // tb) * tb
    if b_pad != B:
        x_half = jnp.pad(x_half, ((0, b_pad - B), (0, 0)))

    out = pl.pallas_call(
        _pbcombi_hidden_kernel,
        out_shape=jax.ShapeDtypeStruct((b_pad, n_pad), jnp.float32),
        grid=(b_pad // tb,),
        in_specs=[
            pl.BlockSpec((tb, d), lambda i: (i, 0)),              # x tile (pipelined)
            pl.BlockSpec((d, S), lambda i: (0, 0),
                         pipeline_mode=pl.Buffered(1)),           # st resident
            pl.BlockSpec((S, n_pad), lambda i: (0, 0),
                         pipeline_mode=pl.Buffered(1)),           # erf table resident
        ],
        out_specs=pl.BlockSpec((tb, n_pad), lambda i: (i, 0)),
        compiler_params=pltpu.CompilerParams(
            dimension_semantics=("parallel",)),
    )(x_half, st, erf_table)

    return out[:B, :out_features]


def _reference(x, weight, bias, s):
    # Pure-JAX reference mirroring the PyTorch code exactly (f32 throughout).
    p_s = 0.5 + 0.5 * x[:, :, None] * s.T[None, :, :]             # (B, d, S)
    p_s_m = jnp.prod(p_s, axis=1)                                 # (B, S)
    lin = s @ weight.T + bias                                     # (S, out)
    erf_val = jax.lax.erf(lin / math.sqrt(2.0 * x.shape[1]))
    erf_val = jnp.squeeze(erf_val)                                # no-op if out > 1
    return p_s_m @ erf_val


if __name__ == "__main__":
    in_features = 8          # -> s has 2**8 = 256 rows
    out_features = 32
    batch = 2

    key = jax.random.PRNGKey(0)
    k_x, k_w, k_b = jax.random.split(key, 3)

    x = jax.random.normal(k_x, (batch, in_features), dtype=jnp.float32)
    weight = jax.random.normal(k_w, (out_features, in_features),
                               dtype=jnp.float32) * (1.0 / math.sqrt(in_features))
    bias = jax.random.normal(k_b, (out_features,), dtype=jnp.float32) * 0.1

    s_np = np.array(list(itertools.product([-1.0, 1.0], repeat=in_features)),
                    dtype=np.float32)        # (256, 8)
    s = jnp.asarray(s_np)

    out = pbcombi_hidden_forward(x, weight, bias, s)
    out = jax.block_until_ready(out)

    ref = _reference(x, weight, bias, s)
    assert out.shape == (batch, out_features)
    # bf16 MXU operands -> ~1e-3 expected relative error (use
    # matmul_dtype=jnp.float32 for the tight-tolerance debug path).
    np.testing.assert_allclose(np.asarray(out), np.asarray(ref),
                               rtol=2e-2, atol=2e-2)
    print("KERNEL_OK")
</pallas_src>

<mosaic_0001>
module attributes {stable_mosaic.version = 11 : i64} {
  func.func @_pbcombi_hidden_kernel(%arg0: i32, %arg1: memref<8x8xf32, #tpu.memory_space<vmem>>, %arg2: memref<8x256xf32, #tpu.memory_space<vmem>>, %arg3: memref<256x128xbf16, #tpu.memory_space<vmem>>, %arg4: memref<8x128xf32, #tpu.memory_space<vmem>>) attributes {dimension_semantics = [#tpu.dimension_semantics<parallel>], iteration_bounds = array<i64: 1>, scalar_prefetch = 0 : i64, scratch_operands = 0 : i64, tpu.core_type = #tpu.core_type<tc>, window_params = [{transform_indices = @transform_0, window_bounds = array<i64: 8, 8>}, {pipeline_mode = #tpu.pipeline_mode<synchronous>, transform_indices = @transform_1, window_bounds = array<i64: 8, 256>}, {pipeline_mode = #tpu.pipeline_mode<synchronous>, transform_indices = @transform_2, window_bounds = array<i64: 256, 128>}, {transform_indices = @transform_3, window_bounds = array<i64: 8, 128>}]} {
    %c0 = arith.constant 0 : index
    %c0_0 = arith.constant 0 : index
    %0 = vector.load %arg1[%c0, %c0_0] : memref<8x8xf32, #tpu.memory_space<vmem>>, vector<8x8xf32>
    %c0_1 = arith.constant 0 : index
    %c0_2 = arith.constant 0 : index
    %1 = vector.load %arg2[%c0_1, %c0_2] : memref<8x256xf32, #tpu.memory_space<vmem>>, vector<8x256xf32>
    %c0_3 = arith.constant 0 : index
    %c0_4 = arith.constant 0 : index
    %2 = vector.load %arg3[%c0_3, %c0_4] : memref<256x128xbf16, #tpu.memory_space<vmem>>, vector<256x128xbf16>
    %3 = vector.extract_strided_slice %0 {offsets = [0, 0], sizes = [8, 1], strides = [1, 1]} : vector<8x8xf32> to vector<8x1xf32>
    %4 = vector.extract_strided_slice %1 {offsets = [0, 0], sizes = [1, 256], strides = [1, 1]} : vector<8x256xf32> to vector<1x256xf32>
    %5 = vector.broadcast %3 : vector<8x1xf32> to vector<8x256xf32>
    %6 = vector.broadcast %4 : vector<1x256xf32> to vector<8x256xf32>
    %7 = arith.mulf %5, %6 : vector<8x256xf32>
    %cst = arith.constant 5.000000e-01 : f32
    %8 = vector.broadcast %cst : f32 to vector<8x256xf32>
    %9 = arith.addf %8, %7 : vector<8x256xf32>
    %10 = vector.extract_strided_slice %0 {offsets = [0, 1], sizes = [8, 1], strides = [1, 1]} : vector<8x8xf32> to vector<8x1xf32>
    %11 = vector.extract_strided_slice %1 {offsets = [1, 0], sizes = [1, 256], strides = [1, 1]} : vector<8x256xf32> to vector<1x256xf32>
    %12 = vector.broadcast %10 : vector<8x1xf32> to vector<8x256xf32>
    %13 = vector.broadcast %11 : vector<1x256xf32> to vector<8x256xf32>
    %14 = arith.mulf %12, %13 : vector<8x256xf32>
    %cst_5 = arith.constant 5.000000e-01 : f32
    %15 = vector.broadcast %cst_5 : f32 to vector<8x256xf32>
    %16 = arith.addf %15, %14 : vector<8x256xf32>
    %17 = arith.mulf %9, %16 : vector<8x256xf32>
    %18 = vector.extract_strided_slice %0 {offsets = [0, 2], sizes = [8, 1], strides = [1, 1]} : vector<8x8xf32> to vector<8x1xf32>
    %19 = vector.extract_strided_slice %1 {offsets = [2, 0], sizes = [1, 256], strides = [1, 1]} : vector<8x256xf32> to vector<1x256xf32>
    %20 = vector.broadcast %18 : vector<8x1xf32> to vector<8x256xf32>
    %21 = vector.broadcast %19 : vector<1x256xf32> to vector<8x256xf32>
    %22 = arith.mulf %20, %21 : vector<8x256xf32>
    %cst_6 = arith.constant 5.000000e-01 : f32
    %23 = vector.broadcast %cst_6 : f32 to vector<8x256xf32>
    %24 = arith.addf %23, %22 : vector<8x256xf32>
    %25 = arith.mulf %17, %24 : vector<8x256xf32>
    %26 = vector.extract_strided_slice %0 {offsets = [0, 3], sizes = [8, 1], strides = [1, 1]} : vector<8x8xf32> to vector<8x1xf32>
    %27 = vector.extract_strided_slice %1 {offsets = [3, 0], sizes = [1, 256], strides = [1, 1]} : vector<8x256xf32> to vector<1x256xf32>
    %28 = vector.broadcast %26 : vector<8x1xf32> to vector<8x256xf32>
    %29 = vector.broadcast %27 : vector<1x256xf32> to vector<8x256xf32>
    %30 = arith.mulf %28, %29 : vector<8x256xf32>
    %cst_7 = arith.constant 5.000000e-01 : f32
    %31 = vector.broadcast %cst_7 : f32 to vector<8x256xf32>
    %32 = arith.addf %31, %30 : vector<8x256xf32>
    %33 = arith.mulf %25, %32 : vector<8x256xf32>
    %34 = vector.extract_strided_slice %0 {offsets = [0, 4], sizes = [8, 1], strides = [1, 1]} : vector<8x8xf32> to vector<8x1xf32>
    %35 = vector.extract_strided_slice %1 {offsets = [4, 0], sizes = [1, 256], strides = [1, 1]} : vector<8x256xf32> to vector<1x256xf32>
    %36 = vector.broadcast %34 : vector<8x1xf32> to vector<8x256xf32>
    %37 = vector.broadcast %35 : vector<1x256xf32> to vector<8x256xf32>
    %38 = arith.mulf %36, %37 : vector<8x256xf32>
    %cst_8 = arith.constant 5.000000e-01 : f32
    %39 = vector.broadcast %cst_8 : f32 to vector<8x256xf32>
    %40 = arith.addf %39, %38 : vector<8x256xf32>
    %41 = arith.mulf %33, %40 : vector<8x256xf32>
    %42 = vector.extract_strided_slice %0 {offsets = [0, 5], sizes = [8, 1], strides = [1, 1]} : vector<8x8xf32> to vector<8x1xf32>
    %43 = vector.extract_strided_slice %1 {offsets = [5, 0], sizes = [1, 256], strides = [1, 1]} : vector<8x256xf32> to vector<1x256xf32>
    %44 = vector.broadcast %42 : vector<8x1xf32> to vector<8x256xf32>
    %45 = vector.broadcast %43 : vector<1x256xf32> to vector<8x256xf32>
    %46 = arith.mulf %44, %45 : vector<8x256xf32>
    %cst_9 = arith.constant 5.000000e-01 : f32
    %47 = vector.broadcast %cst_9 : f32 to vector<8x256xf32>
    %48 = arith.addf %47, %46 : vector<8x256xf32>
    %49 = arith.mulf %41, %48 : vector<8x256xf32>
    %50 = vector.extract_strided_slice %0 {offsets = [0, 6], sizes = [8, 1], strides = [1, 1]} : vector<8x8xf32> to vector<8x1xf32>
    %51 = vector.extract_strided_slice %1 {offsets = [6, 0], sizes = [1, 256], strides = [1, 1]} : vector<8x256xf32> to vector<1x256xf32>
    %52 = vector.broadcast %50 : vector<8x1xf32> to vector<8x256xf32>
    %53 = vector.broadcast %51 : vector<1x256xf32> to vector<8x256xf32>
    %54 = arith.mulf %52, %53 : vector<8x256xf32>
    %cst_10 = arith.constant 5.000000e-01 : f32
    %55 = vector.broadcast %cst_10 : f32 to vector<8x256xf32>
    %56 = arith.addf %55, %54 : vector<8x256xf32>
    %57 = arith.mulf %49, %56 : vector<8x256xf32>
    %58 = vector.extract_strided_slice %0 {offsets = [0, 7], sizes = [8, 1], strides = [1, 1]} : vector<8x8xf32> to vector<8x1xf32>
    %59 = vector.extract_strided_slice %1 {offsets = [7, 0], sizes = [1, 256], strides = [1, 1]} : vector<8x256xf32> to vector<1x256xf32>
    %60 = vector.broadcast %58 : vector<8x1xf32> to vector<8x256xf32>
    %61 = vector.broadcast %59 : vector<1x256xf32> to vector<8x256xf32>
    %62 = arith.mulf %60, %61 : vector<8x256xf32>
    %cst_11 = arith.constant 5.000000e-01 : f32
    %63 = vector.broadcast %cst_11 : f32 to vector<8x256xf32>
    %64 = arith.addf %63, %62 : vector<8x256xf32>
    %65 = arith.mulf %57, %64 : vector<8x256xf32>
    %66 = arith.truncf %65 : vector<8x256xf32> to vector<8x256xbf16>
    %cst_12 = arith.constant dense<0.000000e+00> : vector<8x128xf32>
    %67 = tpu.matmul %66, %2, %cst_12 {dimension_numbers = #tpu.dot_dimension_numbers<[1], [0], [0], [1], [0, 0, 1, 1], [], []>} : vector<8x256xbf16>, vector<256x128xbf16>, vector<8x128xf32> -> vector<8x128xf32>
    %c0_13 = arith.constant 0 : index
    %c0_14 = arith.constant 0 : index
    %68 = vector.load %arg4[%c0_13, %c0_14] : memref<8x128xf32, #tpu.memory_space<vmem>>, vector<8x128xf32>
    tpu.vector_store %arg4[%c0_13, %c0_14], %67 {strides = array<i32>} : memref<8x128xf32, #tpu.memory_space<vmem>>, vector<8x128xf32>,
    return
  }
  func.func @transform_0(%arg0: i32) -> (i32, i32) {
    %c0_i32 = arith.constant 0 : i32
    %c0_i32_0 = arith.constant 0 : i32
    return %arg0, %c0_i32 : i32, i32
  }
  func.func @transform_1(%arg0: i32) -> (i32, i32) {
    %c0_i32 = arith.constant 0 : i32
    %c0_i32_0 = arith.constant 0 : i32
    %c0_i32_1 = arith.constant 0 : i32
    return %c0_i32, %c0_i32_0 : i32, i32
  }
  func.func @transform_2(%arg0: i32) -> (i32, i32) {
    %c0_i32 = arith.constant 0 : i32
    %c0_i32_0 = arith.constant 0 : i32
    %c0_i32_1 = arith.constant 0 : i32
    return %c0_i32, %c0_i32_0 : i32, i32
  }
  func.func @transform_3(%arg0: i32) -> (i32, i32) {
    %c0_i32 = arith.constant 0 : i32
    %c0_i32_0 = arith.constant 0 : i32
    return %arg0, %c0_i32 : i32, i32
  }
}

</mosaic_0001>

<bundles_post_ra>
// kernel: tpu_custom_call.1
= control target key start
LH: loop header
LB: loop body
LE: loop exit
PB: predicated region body
PF: predicated region fallthrough
CT: control target
= control target key end

     0   :  { %8 = vsyncpa [#allocation3], 0  ;;  %s669_s0 = inlined_call_operand.hbm [shape: f32[8,8], index: 0, kind: input, shape index: {}]   ;;  %s670_s1 = inlined_call_operand.hbm [shape: f32[8,256], index: 1, kind: input, shape index: {}]   ;;  %s671_s2 = inlined_call_operand.hbm [shape: bf16[256,128], index: 2, kind: input, shape index: {}]   ;;  %s672_s3 = inlined_call_operand.hbm [shape: f32[8,128], index: 3, kind: output, shape index: {}]  }
   0x1   :  { %9 = vsyncpa [#allocation6], 0 }
   0x2   :  { %10 = vsyncpa [#allocation4], 0  ;;  %s557_s12 = smov [#allocation5]   ;;  %s558_s14 = smov [#allocation2]  }
   0x3   :  { %s27_s13 = sshll.u32 %s557_s12, 4  ;;  %s17_s15 = sshll.u32 %s558_s14, 4  ;;  %s28_s13 = int_to_ptr.vmem [resolvable:$true] %s27_s13  ;;  %s18_s15 = int_to_ptr.vmem [resolvable:$true] %s17_s15 }
   0x4   :  { %s463_s18 = scalar_lea.hbm %s670_s1, 256 }
   0x5   :  { %p464_p0 = scmp.ne.s32.totalorder %s670_s1, %s463_s18  ;;  %p467_p1 = scmp.lt.u32.totalorder %s463_s18, %s670_s1 }
   0x7   :  { %p469_p2 = pnand %p467_p1, %p464_p0 }
   0x9   :  { %472 = shalt.err (!%p469_p2)
}
   0xa   :  { %s473_s23 = scalar_lea.vmem %s28_s13, 256  ;;  %p478_p4 = scmp.lt.s32.totalorder %s28_s13, %s28_s13 }
   0xb   :  { %p474_p3 = scmp.ne.s32.totalorder %s28_s13, %s473_s23  ;;  %p479_p5 = scmp.lt.s32.totalorder %s473_s23, %s473_s23 }
   0xd   :  { %p480_p6 = por %p479_p5, %p478_p4 }
   0xf   :  { %p481_p7 = pnand %p480_p6, %p474_p3 }
  0x11   :  { %484 = shalt.err (!%p481_p7)
}
  0x12   :  { %30 = dma.hbm_to_vmem [thread:$0]  %s670_s1, 256, %s28_s13, [#allocation6]  }
  0x13   :  { %s485_s28 = scalar_lea.hbm %s669_s0, 128 }
  0x14   :  { %p486_p8 = scmp.ne.s32.totalorder %s669_s0, %s485_s28  ;;  %p489_p9 = scmp.lt.u32.totalorder %s485_s28, %s669_s0 }
  0x16   :  { %p491_p10 = pnand %p489_p9, %p486_p8 }
  0x18   :  { %494 = shalt.err (!%p491_p10)
}
  0x19   :  { %s495_s6 = scalar_lea.vmem %s18_s15, 128  ;;  %p500_p12 = scmp.lt.s32.totalorder %s18_s15, %s18_s15 }
  0x1a   :  { %p496_p11 = scmp.ne.s32.totalorder %s18_s15, %s495_s6  ;;  %p501_p13 = scmp.lt.s32.totalorder %s495_s6, %s495_s6 }
  0x1c   :  { %p502_p0 = por %p501_p13, %p500_p12 }
  0x1e   :  { %p503_p1 = pnand %p502_p0, %p496_p11 }
  0x20   :  { %506 = shalt.err (!%p503_p1)
}
  0x21   :  { %20 = dma.hbm_to_vmem [thread:$0]  %s669_s0, 128, %s18_s15, [#allocation3]  }
  0x22   :  { %s559_s8 = smov [#allocation7]   ;;  %s507_s12 = scalar_lea.hbm %s671_s2, 2048 }
  0x23   :  { %s36_s9 = sshll.u32 %s559_s8, 4  ;;  %p508_p2 = scmp.ne.s32.totalorder %s671_s2, %s507_s12  ;;  %s37_s9 = int_to_ptr.vmem [resolvable:$true] %s36_s9 }
  0x24   :  { %p511_p3 = scmp.lt.u32.totalorder %s507_s12, %s671_s2 }
  0x26   :  { %p513_p4 = pnand %p511_p3, %p508_p2 }
  0x28   :  { %516 = shalt.err (!%p513_p4)
}
  0x29   :  { %s517_s18 = scalar_lea.vmem %s37_s9, 2048  ;;  %p522_p6 = scmp.lt.s32.totalorder %s37_s9, %s37_s9 }
  0x2a   :  { %p518_p5 = scmp.ne.s32.totalorder %s37_s9, %s517_s18  ;;  %p523_p7 = scmp.lt.s32.totalorder %s517_s18, %s517_s18 }
  0x2c   :  { %p524_p8 = por %p523_p7, %p522_p6 }
  0x2e   :  { %p525_p9 = pnand %p524_p8, %p518_p5 }
  0x30   :  { %528 = shalt.err (!%p525_p9)
}
  0x31   :  { %s560_s0 = smov 64   ;;  %s561_s15 = smov 4  }
  0x32   :  { %42 = dma.hbm_to_vmem [thread:$0]  %s671_s2, 2048, %s37_s9, [#allocation6], %s560_s0, %s560_s0, %s561_s15  }
  0x33   :  { %551 = dma.done.wait [#allocation3], 128  }
  0x34   :  { %552 = vsyncadd [#allocation3], 4294967168 }
  0x35   :  { %553 = dma.done.wait [#allocation6], 2304  }
  0x36   :  { %554 = vsyncadd [#allocation6], 4294964992  ;;  %v562_v0 = vmov 2   ;;  %v563_v1 = vmov 0   ;;  %v53_v2 = vld [vmem:[#allocation2] sm:$0xff]  ;;  %v447_v3 = vld [vmem:[#allocation7 + $0x40] sm:$0xff]   ;;  %v93_v25 = vlaneseq }
  0x37   :  { %440 = vset.pattern.permute.xlu1 %v562_v0  ;;  %438 = vset.pattern.permute.xlu0 %v563_v1  ;;  %v448_v4 = vld [vmem:[#allocation7] sm:$0xff]   ;;  %v449_v5 = vld [vmem:[#allocation7 + $0x48] sm:$0xff]   ;;  %v564_v7 = vmov 3   ;;  %v565_v8 = vmov 1   ;;  %v451_v9 = vld [vmem:[#allocation7 + $0x50] sm:$0xff]   ;;  %v566_v12 = vmov 4  }
  0x38   :  { %124 = vperm.xlu1 %440, %v53_v2   ;;  %90 = vperm.xlu0 %438, %v53_v2   ;;  %v450_v6 = vld [vmem:[#allocation7 + $0x8] sm:$0xff]   ;;  %v452_v10 = vld [vmem:[#allocation7 + $0x10] sm:$0xff]   ;;  %v453_v11 = vld [vmem:[#allocation7 + $0x58] sm:$0xff]   ;;  %v567_v13 = vmov 5   ;;  %v568_v16 = vmov 6   ;;  %v569_v17 = vmov 7  }
  0x39   :  { %402 = vmatprep.subr.bf16.mxu0 %v447_v3  ;;  %v454_v14 = vld [vmem:[#allocation7 + $0x18] sm:$0xff]   ;;  %v455_v15 = vld [vmem:[#allocation7 + $0x60] sm:$0xff]   ;;  %v457_v19 = vld [vmem:[#allocation7 + $0x68] sm:$0xff]   ;;  %v627_v26 = vshrl.u32 %v93_v25, 7  ;;  %s570_s2 = smov [#allocation8]  }
  0x3a   :  { %403 = vmatpush3.bf16.msra.mxu0 %v448_v4  ;;  %v456_v18 = vld [vmem:[#allocation7 + $0x20] sm:$0xff]   ;;  %v458_v20 = vld [vmem:[#allocation7 + $0x28] sm:$0xff]   ;;  %v459_v21 = vld [vmem:[#allocation7 + $0x70] sm:$0xff]   ;;  %s376_s21 = sshll.u32 %s570_s2, 4  ;;  %s377_s21 = int_to_ptr.vmem [resolvable:$true] %s376_s21 }
  0x3b   :  { %404 = vmatprep.subr.bf16.mxu0 %v449_v5  ;;  %v460_v22 = vld [vmem:[#allocation7 + $0x30] sm:$0xff]   ;;  %v461_v23 = vld [vmem:[#allocation7 + $0x78] sm:$0xff]   ;;  %v95_v27 = vsub.s32 0, %v627_v26  ;;  %v129_v30 = vsub.s32 2, %v627_v26  ;;  %v111_v31 = vsub.s32 1, %v627_v26  ;;  %v147_v36 = vsub.s32 3, %v627_v26  ;;  %p534_p11 = scmp.lt.s32.totalorder %s377_s21, %s377_s21 }
  0x3c   :  { %441 = vset.pattern.permute.xlu1 %v564_v7  ;;  %439 = vset.pattern.permute.xlu0 %v565_v8  ;;  %v462_v24 = vld [vmem:[#allocation7 + $0x38] sm:$0xff]   ;;  %v630_v28 = vld [vmem:[#allocation5] sm:$0xff]  ;;  %v165_v37 = vsub.s32 4, %v627_v26  ;;  %v183_v44 = vsub.s32 5, %v627_v26  ;;  %v201_v51 = vsub.s32 6, %v627_v26  ;;  %s529_s22 = scalar_lea.vmem %s377_s21, 128 }
  0x3d   :  { %142 = vperm.xlu1 %441, %v53_v2   ;;  %106 = vperm.xlu0 %439, %v53_v2   ;;  %v632_v29 = vld [vmem:[#allocation5 + $0x8] sm:$0xff]  ;;  %v96_v32 = vrot.slane %v630_v28, %v95_v27  ;;  %v130_v38 = vrot.slane %v630_v28, %v129_v30  ;;  %v112_v40 = vrot.slane %v630_v28, %v111_v31  ;;  %p530_p10 = scmp.ne.s32.totalorder %s377_s21, %s529_s22  ;;  %p535_p12 = scmp.lt.s32.totalorder %s529_s22, %s529_s22 }
  0x3e   :  { %405 = vmatpush3.bf16.msra.mxu0 %v450_v6  ;;  %v100_v33 = vrot.slane %v632_v29, %v95_v27  ;;  %v134_v39 = vrot.slane %v632_v29, %v129_v30  ;;  %v116_v41 = vrot.slane %v632_v29, %v111_v31  ;;  %v148_v45 = vrot.slane %v630_v28, %v147_v36 }
  0x3f   :  { %406 = vmatprep.subr.bf16.mxu0 %v451_v9  ;;  %v152_v46 = vrot.slane %v632_v29, %v147_v36  ;;  %v166_v49 = vrot.slane %v630_v28, %v165_v37  ;;  %v170_v50 = vrot.slane %v632_v29, %v165_v37  ;;  %v184_v58 = vrot.slane %v630_v28, %v183_v44  ;;  %p536_p13 = por %p535_p12, %p534_p11 }
  0x40   :  { %v188_v59 = vrot.slane %v632_v29, %v183_v44  ;;  %v202_v0 = vrot.slane %v630_v28, %v201_v51  ;;  %v206_v1 = vrot.slane %v632_v29, %v201_v51 }
  0x41   :  { %442 = vset.pattern.permute.xlu1 %v566_v12  ;;  %443 = vset.pattern.permute.xlu0 %v567_v13  ;;  %p537_p0 = pnand %p536_p13, %p530_p10 }
  0x42   :  { %160 = vperm.xlu1 %442, %v53_v2   ;;  %178 = vperm.xlu0 %443, %v53_v2  }
  0x43   :  { %407 = vmatpush3.bf16.msra.mxu0 %v452_v10 }
  0x44   :  { %408 = vmatprep.subr.bf16.mxu0 %v453_v11 }
  0x46   :  { %444 = vset.pattern.permute.xlu1 %v568_v16  ;;  %446 = vset.pattern.permute.xlu0 %v569_v17 }
  0x47   :  { %196 = vperm.xlu1 %444, %v53_v2   ;;  %409 = vmatpush3.bf16.msra.mxu0 %v454_v14 }
  0x48   :  { %410 = vmatprep.subr.bf16.mxu0 %v455_v15 }
  0x4b   :  { %445 = vset.pattern.permute.xlu1 %v569_v17  ;;  %411 = vmatpush3.bf16.msra.mxu0 %v456_v18  ;;  %v219_v18 = vsub.s32 7, %v627_v26 }
  0x4c   :  { %214 = vperm.xlu1 %445, %v53_v2   ;;  %412 = vmatprep.subr.bf16.mxu0 %v457_v19 }
  0x4d   :  { %v220_v31 = vrot.slane %v630_v28, %v219_v18 }
  0x4f   :  { %413 = vmatpush3.bf16.msra.mxu0 %v458_v20 }
  0x50   :  { %414 = vmatprep.subr.bf16.mxu0 %v459_v21 }
  0x53   :  { %415 = vmatpush3.bf16.msra.mxu0 %v460_v22 }
  0x54   :  { %416 = vmatprep.subr.bf16.mxu0 %v461_v23 }
  0x57   :  { %417 = vmatpush3.bf16.msra.mxu0 %v462_v24 }
  0xb7   :  { %v125_v34 = vpop.permute.xlu1 %124  ;;  %v91_v35 = vpop.permute.xlu0 %90 }
  0xb8   :  { %v101_v42 = vmul.f32 %v96_v32, %v91_v35  ;;  %v102_v43 = vmul.f32 %v100_v33, %v91_v35  ;;  %v135_v52 = vmul.f32 %v130_v38, %v125_v34  ;;  %v136_v53 = vmul.f32 %v134_v39, %v125_v34 }
  0xb9   :  { %v224_v32 = vrot.slane %v632_v29, %v219_v18 }
  0xba   :  { %v103_v56 = vadd.f32 0.5, %v101_v42  ;;  %v104_v57 = vadd.f32 0.5, %v102_v43  ;;  %v137_v2 = vadd.f32 0.5, %v135_v52  ;;  %v138_v3 = vadd.f32 0.5, %v136_v53 }
  0xbc   :  { %v143_v47 = vpop.permute.xlu1 %142  ;;  %v107_v48 = vpop.permute.xlu0 %106 }
  0xbd   :  { %v117_v54 = vmul.f32 %v112_v40, %v107_v48  ;;  %v118_v55 = vmul.f32 %v116_v41, %v107_v48  ;;  %v153_v60 = vmul.f32 %v148_v45, %v143_v47  ;;  %v154_v61 = vmul.f32 %v152_v46, %v143_v47 }
  0xbf   :  { %v119_v62 = vadd.f32 0.5, %v117_v54  ;;  %v120_v63 = vadd.f32 0.5, %v118_v55  ;;  %v155_v12 = vadd.f32 0.5, %v153_v60  ;;  %v156_v13 = vadd.f32 0.5, %v154_v61 }
  0xc1   :  { %v121_v4 = vmul.f32 %v119_v62, %v103_v56  ;;  %v122_v5 = vmul.f32 %v120_v63, %v104_v57  ;;  %v161_v6 = vpop.permute.xlu1 %160  ;;  %v179_v7 = vpop.permute.xlu0 %178 }
  0xc2   :  { %v171_v8 = vmul.f32 %v166_v49, %v161_v6  ;;  %v172_v9 = vmul.f32 %v170_v50, %v161_v6  ;;  %v189_v10 = vmul.f32 %v184_v58, %v179_v7  ;;  %v190_v11 = vmul.f32 %v188_v59, %v179_v7 }
  0xc3   :  { %v139_v14 = vmul.f32 %v137_v2, %v121_v4  ;;  %v140_v15 = vmul.f32 %v138_v3, %v122_v5 }
  0xc4   :  { %v173_v16 = vadd.f32 0.5, %v171_v8  ;;  %v174_v17 = vadd.f32 0.5, %v172_v9  ;;  %v191_v21 = vadd.f32 0.5, %v189_v10  ;;  %v192_v22 = vadd.f32 0.5, %v190_v11 }
  0xc5   :  { %v157_v19 = vmul.f32 %v155_v12, %v139_v14  ;;  %v158_v20 = vmul.f32 %v156_v13, %v140_v15 }
  0xc6   :  { %v197_v23 = vpop.permute.xlu1 %196 }
  0xc7   :  { %v175_v24 = vmul.f32 %v173_v16, %v157_v19  ;;  %v176_v25 = vmul.f32 %v174_v17, %v158_v20  ;;  %v207_v27 = vmul.f32 %v202_v0, %v197_v23  ;;  %v208_v30 = vmul.f32 %v206_v1, %v197_v23 }
  0xc9   :  { %v193_v33 = vmul.f32 %v191_v21, %v175_v24  ;;  %v194_v34 = vmul.f32 %v192_v22, %v176_v25  ;;  %v209_v35 = vadd.f32 0.5, %v207_v27  ;;  %v210_v36 = vadd.f32 0.5, %v208_v30 }
  0xcb   :  { %v215_v37 = vpop.permute.xlu1 %214  ;;  %v211_v39 = vmul.f32 %v209_v35, %v193_v33  ;;  %v212_v42 = vmul.f32 %v210_v36, %v194_v34 }
  0xcc   :  { %v225_v38 = vmul.f32 %v220_v31, %v215_v37  ;;  %v226_v26 = vmul.f32 %v224_v32, %v215_v37 }
  0xce   :  { %v227_v40 = vadd.f32 0.5, %v225_v38  ;;  %v228_v41 = vadd.f32 0.5, %v226_v26 }
  0xd0   :  { %v229_v43 = vmul.f32 %v227_v40, %v211_v39  ;;  %v230_v44 = vmul.f32 %v228_v41, %v212_v42 }
  0xd2   :  { %v231_v45 = vpack.c.bf16 %v229_v43, %v229_v43  ;;  %v232_v46 = vpack.c.bf16 %v230_v44, %v230_v44 }
  0xd4   :  { %361 = vmatprep.mubr.bf16.mxu0 %v232_v46 }
  0xd5   :  { %362 = vmatmul.mubr.bf16.vlgmr.msra.gmra.mrb[0].mxu0 %v231_v45 }
 0x1a8   :  { %v418_v28 = vpop.f32.mrb[0].mxu0 }
 0x1a9   :  { %v419_v29 = vpop.f32.mrb[1].mxu0 }
 0x1aa   :  { %v420_v47 = vadd.f32 %v419_v29, %v418_v28  ;;  %v421_v48 = vpop.f32.mrb[2].mxu0 }
 0x1ab   :  { %v422_v49 = vpop.f32.mrb[3].mxu0 }
 0x1ac   :  { %369 = vst [vmem:[#allocation8] sm:$0xff] %v420_v47 }
 0x1ad   :  { %540 = shalt.err (!%p537_p0)
}
 0x1ae   :  { %s541_s25 = scalar_lea.hbm %s672_s3, 128 }
 0x1af   :  { %p542_p1 = scmp.ne.s32.totalorder %s672_s3, %s541_s25  ;;  %p545_p2 = scmp.lt.u32.totalorder %s541_s25, %s672_s3 }
 0x1b1   :  { %p547_p3 = pnand %p545_p2, %p542_p1 }
 0x1b3   :  { %550 = shalt.err (!%p547_p3)
}
 0x1b4   :  { %379 = dma.vmem_to_hbm [thread:$0]  %s377_s21, 128, %s672_s3, [#allocation4]  }
 0x1b5   :  { %555 = dma.done.wait [#allocation4], 128  }
 0x1b6   :  { %556 = vsyncadd [#allocation4], 4294967168 }
 0x1b7   :  { %383 = vsyncpa [#allocation3], 1 }
 0x1b8   :  { %384 = vsyncpa [#allocation6], 1 }
 0x1b9   :  { %385 = vsyncpa [#allocation4], 1 }

</bundles_post_ra>
